<compile_context>
chip_gen: v7x
topology: tpu7x:2x2x1
jax: 0.10.0
libtpu: 0.0.40
codegen_flags: <defaults>
</compile_context>

<pallas_src>
import jax
import jax.numpy as jnp
from jax.experimental import pallas as pl
from jax.experimental.pallas import tpu as pltpu


def _qgemm_kernel(x_ref, qw_ref, scale_ref, bias_ref, o_ref, acc_ref):
    k = pl.program_id(2)

    @pl.when(k == 0)
    def _():
        acc_ref[...] = jnp.zeros_like(acc_ref)

    qw = qw_ref[...]                                      # (tk//8, tn) int32
    # Unpack 8 nibbles per int32.  Offline packing is s-major within the group,
    # so restoring K-order is a plain concat along the sublane axis (no
    # cross-sublane interleave).  Keep the & 0xF mask: >> on int32 is an
    # arithmetic shift and sign-extends the top nibble.
    nibs = [(qw >> (4 * s)) & 0xF for s in range(8)]
    codes = jnp.concatenate(nibs, axis=0)                 # (tk, tn) int32
    # Center in int32, cast to bf16 only at the MXU boundary (v5e has no bf16
    # VALU path); codes-8 in [-8, 7] is exact in bf16.
    w = (codes - 8).astype(jnp.bfloat16)                  # (tk, tn) bf16

    # Group scale is constant across this k-tile -> hoist it after the matmul:
    # x @ ((c-8)*s) == (x @ (c-8)) * s.  Moves tk*tn multiplies down to tm*tn.
    scale = scale_ref[0]                                  # (1, tn) f32
    acc_ref[...] += jnp.dot(x_ref[...], w,
                            preferred_element_type=jnp.float32) * scale

    @pl.when(k == pl.num_programs(2) - 1)
    def _():
        # Fused epilogue: bias add + low-precision store (lane-dense, tn%128==0).
        o_ref[...] = (acc_ref[...] + bias_ref[...]).astype(o_ref.dtype)


def quant_gemm(x2d, q_weight, scales, bias, *, tm, tk, tn=None):
    """x2d: (M, K), q_weight: (K//8, N) i32 (s-major packed per group),
    scales: (G, N) f32 with G == K//tk, bias: (N,) -> (M, N) bf16."""
    M, K = x2d.shape
    kp8, N = q_weight.shape
    G = scales.shape[0]
    assert kp8 * 8 == K and tk % 8 == 0 and K % tk == 0
    assert G == K // tk, "one scale group per K tile (group_size == tk)"
    assert M % tm == 0 and tm % 8 == 0

    if tn is None:
        tn = 256 if N % 256 == 0 else (128 if N % 128 == 0 else N)
    assert N % tn == 0

    x2d = x2d.astype(jnp.bfloat16)                  # bf16 MXU operand, half DMA
    scales3 = scales.reshape(G, 1, N)               # (1,1,tn) blocks per k-step
    bias2 = bias.reshape(1, N).astype(jnp.float32)

    grid = (M // tm, N // tn, K // tk)
    cost = pl.CostEstimate(
        flops=2 * M * N * K,
        transcendentals=0,
        bytes_accessed=M * K * 2 + kp8 * N * 4 + G * N * 4 + N * 4 + M * N * 2)

    return pl.pallas_call(
        _qgemm_kernel,
        out_shape=jax.ShapeDtypeStruct((M, N), jnp.bfloat16),
        grid_spec=pltpu.PrefetchScalarGridSpec(
            num_scalar_prefetch=0,
            grid=grid,
            in_specs=[
                pl.BlockSpec((tm, tk), lambda i, j, k: (i, k)),
                pl.BlockSpec((tk // 8, tn), lambda i, j, k: (k, j)),
                pl.BlockSpec((1, 1, tn), lambda i, j, k: (k, 0, j)),
                pl.BlockSpec((1, tn), lambda i, j, k: (0, j)),
            ],
            out_specs=pl.BlockSpec((tm, tn), lambda i, j, k: (i, j)),
            scratch_shapes=[pltpu.VMEM((tm, tn), jnp.float32)],
        ),
        compiler_params=pltpu.CompilerParams(
            dimension_semantics=("parallel", "parallel", "arbitrary")),
        cost_estimate=cost,
    )(x2d, q_weight, scales3, bias2)


class QuantLinearPallas:
    """JAX/Pallas analogue of QuantLinear with synthetic 4-bit weights."""

    def __init__(self, infeatures, outfeatures, bias, key, group_size=256):
        self.padding = (-outfeatures) % 32
        self.infeatures = infeatures
        self.outfeatures = outfeatures + self.padding
        # The torch module's bias has unpadded shape; demo assumes padding == 0.
        assert self.padding == 0, "outfeatures must be a multiple of 32"
        assert infeatures % group_size == 0 and group_size % 128 == 0
        self.group_size = group_size
        K, N, G = infeatures, self.outfeatures, infeatures // group_size

        k_codes, k_scale, k_bias = jax.random.split(key, 3)
        # Deterministic synthetic quantized parameters (logical layout).
        self._codes = jax.random.randint(k_codes, (K, N), 0, 16, dtype=jnp.int32)
        self.scales = jax.random.uniform(
            k_scale, (G, N), dtype=jnp.float32, minval=0.01, maxval=0.02)

        # Offline repack: within group g (group_size rows), packed local row p,
        # nibble s holds logical row g*gs + s*(gs//8) + p -> kernel unpack is a
        # plain sublane concat.  Pack in uint32 with OR (no signed-overflow
        # tricks) and bitcast to int32.
        gs = group_size
        c = self._codes.reshape(G, 8, gs // 8, N).astype(jnp.uint32)  # [g,s,p,n]
        packed = jnp.zeros((G, gs // 8, N), dtype=jnp.uint32)
        for s in range(8):
            packed = packed | (c[:, s] << (4 * s))
        self.q_weight = jax.lax.bitcast_convert_type(
            packed.reshape(K // 8, N), jnp.int32)

        # q_invperm is identity in __init__, so no gather is applied in forward.
        # TODO(synk): EXL2 act-order perm / variable-bit q_groups / q_scale_max
        # (ext_c.make_q_matrix) not modeled.
        self.q_perm = jnp.arange(K, dtype=jnp.int32)

        if bias:
            self.bias = (0.1 * jax.random.normal(k_bias, (self.outfeatures,))
                         ).astype(jnp.float16)
        else:
            self.bias = None

    def dequant_ref(self):
        scale_full = jnp.repeat(self.scales, self.group_size, axis=0)  # (K, N)
        return (self._codes - 8).astype(jnp.float32) * scale_full

    def forward(self, x):
        old_dtype = x.dtype
        output_shape = x.shape[:-1] + (self.outfeatures,)
        # TODO(synk): torch path stores the GEMM output in float16; we use
        # bfloat16 (TPU-native low-precision) for the MXU operands and output.
        x2d = x.reshape(-1, x.shape[-1]).astype(jnp.bfloat16)
        M = x2d.shape[0]

        # Pad ragged M instead of asserting; pick tm = full M (rounded to 8)
        # for decode-size batches, 256 for prefill-size batches.
        tm = 256 if M >= 256 else max(8, -(-M // 8) * 8)
        M_pad = -(-M // tm) * tm
        if M_pad != M:
            x2d = jnp.pad(x2d, ((0, M_pad - M), (0, 0)))

        bias = (self.bias if self.bias is not None
                else jnp.zeros((self.outfeatures,), jnp.float16))
        out = quant_gemm(x2d, self.q_weight, self.scales, bias,
                         tm=tm, tk=self.group_size)          # (M_pad, N) bf16
        out = out[:M].reshape(output_shape)                   # bias already fused
        return out.astype(old_dtype)


if __name__ == "__main__":
    batch, seq, infeat, outfeat = 2, 8, 512, 256
    key = jax.random.PRNGKey(0)
    k_layer, k_x = jax.random.split(key)

    layer = QuantLinearPallas(infeat, outfeat, bias=True, key=k_layer,
                              group_size=256)
    x = jax.random.normal(k_x, (batch, seq, infeat), dtype=jnp.float32)

    y = layer.forward(x)
    y = jax.block_until_ready(y)

    # Pure-JAX reference of the same semantics (bf16 activation / MXU path).
    w_dq = layer.dequant_ref()
    x2d = x.reshape(-1, infeat).astype(jnp.bfloat16).astype(jnp.float32)
    y_ref = (x2d @ w_dq + layer.bias.astype(jnp.float32)).astype(jnp.bfloat16)
    y_ref = y_ref.reshape(batch, seq, outfeat).astype(x.dtype)

    assert y.shape == (batch, seq, outfeat), y.shape
    assert y.dtype == x.dtype
    err = float(jnp.max(jnp.abs(y - y_ref)))
    assert jnp.allclose(y, y_ref, atol=2e-2, rtol=2e-2), err
    print("KERNEL_OK")
</pallas_src>

<mosaic_0001>
module attributes {stable_mosaic.version = 11 : i64} {
  func.func @_qgemm_kernel(%arg0: i32, %arg1: i32, %arg2: i32, %arg3: memref<16x256xbf16, #tpu.memory_space<vmem>>, %arg4: memref<32x256xi32, #tpu.memory_space<vmem>>, %arg5: memref<1x1x256xf32, #tpu.memory_space<vmem>>, %arg6: memref<1x256xf32, #tpu.memory_space<vmem>>, %arg7: memref<16x256xbf16, #tpu.memory_space<vmem>>, %arg8: memref<16x256xf32, #tpu.memory_space<vmem>>) attributes {dimension_semantics = [#tpu.dimension_semantics<parallel>, #tpu.dimension_semantics<parallel>, #tpu.dimension_semantics<arbitrary>], iteration_bounds = array<i64: 1, 1, 2>, scalar_prefetch = 0 : i64, scratch_operands = 1 : i64, tpu.core_type = #tpu.core_type<tc>, window_params = [{transform_indices = @transform_0, window_bounds = array<i64: 16, 256>}, {transform_indices = @transform_1, window_bounds = array<i64: 32, 256>}, {transform_indices = @transform_2, window_bounds = array<i64: 1, 1, 256>}, {transform_indices = @transform_3, window_bounds = array<i64: 1, 256>}, {transform_indices = @transform_4, window_bounds = array<i64: 16, 256>}]} {
    %c0_i32 = arith.constant 0 : i32
    %0 = arith.cmpi eq, %arg2, %c0_i32 : i32
    %1 = arith.extui %0 : i1 to i32
    %c0_i32_0 = arith.constant 0 : i32
    %2 = arith.cmpi ne, %1, %c0_i32_0 : i32
    scf.if %2 {
      %cst_21 = arith.constant 0.000000e+00 : f32
      %52 = vector.broadcast %cst_21 : f32 to vector<16x256xf32>
      %c0_22 = arith.constant 0 : index
      %c0_23 = arith.constant 0 : index
      %53 = vector.load %arg8[%c0_22, %c0_23] : memref<16x256xf32, #tpu.memory_space<vmem>>, vector<16x256xf32>
      tpu.vector_store %arg8[%c0_22, %c0_23], %52 {strides = array<i32>} : memref<16x256xf32, #tpu.memory_space<vmem>>, vector<16x256xf32>,
    } else {
    }
    %c0 = arith.constant 0 : index
    %c0_1 = arith.constant 0 : index
    %3 = vector.load %arg4[%c0, %c0_1] : memref<32x256xi32, #tpu.memory_space<vmem>>, vector<32x256xi32>
    %c0_i32_2 = arith.constant 0 : i32
    %4 = vector.broadcast %c0_i32_2 : i32 to vector<32x256xi32>
    %5 = arith.shrsi %3, %4 : vector<32x256xi32>
    %c15_i32 = arith.constant 15 : i32
    %6 = vector.broadcast %c15_i32 : i32 to vector<32x256xi32>
    %7 = arith.andi %5, %6 : vector<32x256xi32>
    %c4_i32 = arith.constant 4 : i32
    %8 = vector.broadcast %c4_i32 : i32 to vector<32x256xi32>
    %9 = arith.shrsi %3, %8 : vector<32x256xi32>
    %c15_i32_3 = arith.constant 15 : i32
    %10 = vector.broadcast %c15_i32_3 : i32 to vector<32x256xi32>
    %11 = arith.andi %9, %10 : vector<32x256xi32>
    %c8_i32 = arith.constant 8 : i32
    %12 = vector.broadcast %c8_i32 : i32 to vector<32x256xi32>
    %13 = arith.shrsi %3, %12 : vector<32x256xi32>
    %c15_i32_4 = arith.constant 15 : i32
    %14 = vector.broadcast %c15_i32_4 : i32 to vector<32x256xi32>
    %15 = arith.andi %13, %14 : vector<32x256xi32>
    %c12_i32 = arith.constant 12 : i32
    %16 = vector.broadcast %c12_i32 : i32 to vector<32x256xi32>
    %17 = arith.shrsi %3, %16 : vector<32x256xi32>
    %c15_i32_5 = arith.constant 15 : i32
    %18 = vector.broadcast %c15_i32_5 : i32 to vector<32x256xi32>
    %19 = arith.andi %17, %18 : vector<32x256xi32>
    %c16_i32 = arith.constant 16 : i32
    %20 = vector.broadcast %c16_i32 : i32 to vector<32x256xi32>
    %21 = arith.shrsi %3, %20 : vector<32x256xi32>
    %c15_i32_6 = arith.constant 15 : i32
    %22 = vector.broadcast %c15_i32_6 : i32 to vector<32x256xi32>
    %23 = arith.andi %21, %22 : vector<32x256xi32>
    %c20_i32 = arith.constant 20 : i32
    %24 = vector.broadcast %c20_i32 : i32 to vector<32x256xi32>
    %25 = arith.shrsi %3, %24 : vector<32x256xi32>
    %c15_i32_7 = arith.constant 15 : i32
    %26 = vector.broadcast %c15_i32_7 : i32 to vector<32x256xi32>
    %27 = arith.andi %25, %26 : vector<32x256xi32>
    %c24_i32 = arith.constant 24 : i32
    %28 = vector.broadcast %c24_i32 : i32 to vector<32x256xi32>
    %29 = arith.shrsi %3, %28 : vector<32x256xi32>
    %c15_i32_8 = arith.constant 15 : i32
    %30 = vector.broadcast %c15_i32_8 : i32 to vector<32x256xi32>
    %31 = arith.andi %29, %30 : vector<32x256xi32>
    %c28_i32 = arith.constant 28 : i32
    %32 = vector.broadcast %c28_i32 : i32 to vector<32x256xi32>
    %33 = arith.shrsi %3, %32 : vector<32x256xi32>
    %c15_i32_9 = arith.constant 15 : i32
    %34 = vector.broadcast %c15_i32_9 : i32 to vector<32x256xi32>
    %35 = arith.andi %33, %34 : vector<32x256xi32>
    %36 = tpu.concatenate %7, %11, %15, %19, %23, %27, %31, %35 in 0 : vector<32x256xi32>, vector<32x256xi32>, vector<32x256xi32>, vector<32x256xi32>, vector<32x256xi32>, vector<32x256xi32>, vector<32x256xi32>, vector<32x256xi32> -> vector<256x256xi32>
    %c8_i32_10 = arith.constant 8 : i32
    %37 = vector.broadcast %c8_i32_10 : i32 to vector<256x256xi32>
    %38 = arith.subi %36, %37 : vector<256x256xi32>
    %39 = arith.sitofp %38 : vector<256x256xi32> to vector<256x256xbf16>
    %c0_11 = arith.constant 0 : index
    %c0_12 = arith.constant 0 : index
    %c0_13 = arith.constant 0 : index
    %40 = vector.load %arg5[%c0_11, %c0_12, %c0_13] : memref<1x1x256xf32, #tpu.memory_space<vmem>>, vector<1x1x256xf32>
    %41 = vector.shape_cast %40 : vector<1x1x256xf32> to vector<1x256xf32>
    %c0_14 = arith.constant 0 : index
    %c0_15 = arith.constant 0 : index
    %42 = vector.load %arg8[%c0_14, %c0_15] : memref<16x256xf32, #tpu.memory_space<vmem>>, vector<16x256xf32>
    %c0_16 = arith.constant 0 : index
    %c0_17 = arith.constant 0 : index
    %43 = vector.load %arg3[%c0_16, %c0_17] : memref<16x256xbf16, #tpu.memory_space<vmem>>, vector<16x256xbf16>
    %cst = arith.constant dense<0.000000e+00> : vector<16x256xf32>
    %44 = tpu.matmul %43, %39, %cst {dimension_numbers = #tpu.dot_dimension_numbers<[1], [0], [0], [1], [0, 0, 1, 1], [], []>} : vector<16x256xbf16>, vector<256x256xbf16>, vector<16x256xf32> -> vector<16x256xf32>
    %45 = vector.broadcast %41 : vector<1x256xf32> to vector<16x256xf32>
    %46 = arith.mulf %44, %45 : vector<16x256xf32>
    %47 = arith.addf %42, %46 : vector<16x256xf32>
    %c0_18 = arith.constant 0 : index
    %c0_19 = arith.constant 0 : index
    %48 = vector.load %arg8[%c0_18, %c0_19] : memref<16x256xf32, #tpu.memory_space<vmem>>, vector<16x256xf32>
    tpu.vector_store %arg8[%c0_18, %c0_19], %47 {strides = array<i32>} : memref<16x256xf32, #tpu.memory_space<vmem>>, vector<16x256xf32>,
    %c1_i32 = arith.constant 1 : i32
    %49 = arith.cmpi eq, %arg2, %c1_i32 : i32
    %50 = arith.extui %49 : i1 to i32
    %c0_i32_20 = arith.constant 0 : i32
    %51 = arith.cmpi ne, %50, %c0_i32_20 : i32
    scf.if %51 {
      %c0_21 = arith.constant 0 : index
      %c0_22 = arith.constant 0 : index
      %52 = vector.load %arg8[%c0_21, %c0_22] : memref<16x256xf32, #tpu.memory_space<vmem>>, vector<16x256xf32>
      %c0_23 = arith.constant 0 : index
      %c0_24 = arith.constant 0 : index
      %53 = vector.load %arg6[%c0_23, %c0_24] : memref<1x256xf32, #tpu.memory_space<vmem>>, vector<1x256xf32>
      %54 = vector.broadcast %53 : vector<1x256xf32> to vector<16x256xf32>
      %55 = arith.addf %52, %54 : vector<16x256xf32>
      %56 = arith.truncf %55 : vector<16x256xf32> to vector<16x256xbf16>
      %c0_25 = arith.constant 0 : index
      %c0_26 = arith.constant 0 : index
      %57 = vector.load %arg7[%c0_25, %c0_26] : memref<16x256xbf16, #tpu.memory_space<vmem>>, vector<16x256xbf16>
      tpu.vector_store %arg7[%c0_25, %c0_26], %56 {strides = array<i32>} : memref<16x256xbf16, #tpu.memory_space<vmem>>, vector<16x256xbf16>,
    } else {
    }
    return
  }
  func.func @transform_0(%arg0: i32, %arg1: i32, %arg2: i32) -> (i32, i32) {
    %c0_i32 = arith.constant 0 : i32
    return %arg0, %arg2 : i32, i32
  }
  func.func @transform_1(%arg0: i32, %arg1: i32, %arg2: i32) -> (i32, i32) {
    %c0_i32 = arith.constant 0 : i32
    return %arg2, %arg1 : i32, i32
  }
  func.func @transform_2(%arg0: i32, %arg1: i32, %arg2: i32) -> (i32, i32, i32) {
    %c0_i32 = arith.constant 0 : i32
    %c0_i32_0 = arith.constant 0 : i32
    return %arg2, %c0_i32, %arg1 : i32, i32, i32
  }
  func.func @transform_3(%arg0: i32, %arg1: i32, %arg2: i32) -> (i32, i32) {
    %c0_i32 = arith.constant 0 : i32
    %c0_i32_0 = arith.constant 0 : i32
    return %c0_i32, %arg1 : i32, i32
  }
  func.func @transform_4(%arg0: i32, %arg1: i32, %arg2: i32) -> (i32, i32) {
    %c0_i32 = arith.constant 0 : i32
    return %arg0, %arg1 : i32, i32
  }
}

</mosaic_0001>

<bundles_post_ra>
// kernel: tpu_custom_call.1
= control target key start
LH: loop header
LB: loop body
LE: loop exit
PB: predicated region body
PF: predicated region fallthrough
CT: control target
= control target key end

     0   :  { %9 = vsyncpa [#allocation4], 0  ;;  %s1552_s0 = inlined_call_operand.hbm [shape: bf16[16,512], index: 0, kind: input, shape index: {}]   ;;  %s1553_s1 = inlined_call_operand.hbm [shape: s32[64,256], index: 1, kind: input, shape index: {}]   ;;  %s1554_s2 = inlined_call_operand.vmem [shape: f32[2,1,256], index: 2, kind: input, shape index: {}]   ;;  %s1555_s3 = inlined_call_operand.vmem [shape: f32[1,256], index: 3, kind: input, shape index: {}]   ;;  %s1556_s4 = inlined_call_operand.hbm [shape: bf16[16,256], index: 4, kind: output, shape index: {}]  }
   0x1   :  { %11 = vsyncpa [#allocation4 + $0x1], 0 }
   0x2   :  { %12 = vsyncpa [#allocation7], 0 }
   0x3   :  { %14 = vsyncpa [#allocation7 + $0x1], 0 }
   0x4   :  { %15 = vsyncpa [#allocation5], 0  ;;  %s1253_s15 = smov 0   ;;  %s1255_s16 = smov 0  }
   0x5   :  { %s1257_s17 = smov 0   ;;  %s1259_s18 = smov 0  }
   0x6   :  { %s1261_s19 = smov 0   ;;  %s1263_s20 = smov 0  }
   0x7 LB: > { %s893_s21 = sadd.s32 4294967295, %s1216_s20   ;;  %s33_s22 = sadd.s32 1, %s1212_s19  ;;  %s1216_s20 = sphi %s1263_s20, %s21_s20   ;;  %s1212_s19 = sphi %s1261_s19, %s1569_s19   ;;  %s1208_s18 = sphi %s1259_s18, %s1568_s18   ;;  %s1204_s17 = sphi %s1257_s17, %s1567_s17   ;;  %s1200_s16 = sphi %s1255_s16, %s1566_s16   ;;  %s1196_s15 = sphi %s1253_s15, %s1565_s15  }
   0x8   : > { %p34_p0 = scmp.ge.s32.totalorder %s33_s22, 2  ;;  %s49_s23 = sadd.s32 1, %s1204_s17 }
   0x9   : > { %p56_p1 = scmp.ne.s32.totalorder %s1204_s17, %s1200_s16  ;;  %p57_p2 = scmp.eq.s32.totalorder %s1216_s20, 0 }
   0xa   : > { %s1571_s22 = smov (%p34_p0, %s33_s22), 0  ;;  %p62_p4 = scmp.ne.s32.totalorder %s1200_s16, %s1196_s15 }
   0xb   : > { %p1289_p3 = por %p57_p2, %p56_p1  ;;  %s45_s25 = ssub.s32 %s1212_s19, %s1571_s22 }
   0xc   : > { %p63_p5 = scmp.eq.s32.totalorder %s893_s21, 0  ;;  %p47_p6 = scmp.eq.s32.totalorder %s45_s25, 0 }
   0xd   : > { %p1010_p8 = scmp.lt.s32.totalorder %s1216_s20, 2  ;;  %s1307_s28 = sand.u32 1, %s1204_s17  }
   0xe   : > { %p1298_p7 = por %p63_p5, %p62_p4  ;;  %s990_s29 = sshll.u32 %s1212_s19, 7 }
   0xf   : > { %s1304_s27 = scalar_select %p47_p6, %s1204_s17, %s49_s23  }
  0x10   : > { %s1559_s26 = scalar_select %p1298_p7, 1, 0 }
  0x11   : > { %s897_s30 = sshll.u32 %s1307_s28, 4  ;;  %s1314_s7 = scalar_lea.hbm %s1552_s0, %s990_s29 }
  0x12   : > { %s208_s8 = scalar_lea.vmem [#allocation3], %s897_s30  ;;  %p1318_p9 = pnand %p1010_p8, %p1289_p3 }
  0x13   : > { %s218_s9 = sshll.u32 %s208_s8, 4  ;;  %s205_s11 = scalar_lea.sflag [#allocation4], %s1307_s28  ;;  %s1322_s9 = int_to_ptr.vmem [resolvable:$true] %s218_s9 }
  0x14   : > { %s1072_s12 = scalar_lea.hbm %s1314_s7, 256  ;;  %p1074_p12 = pneg %p1318_p9 }
  0x15   : > { %p1073_p11 = scmp.ne.s32.totalorder %s1314_s7, %s1072_s12  ;;  %s1077_s15 = scalar_lea.hbm %s1552_s0, 512 }
  0x16   : > { %p1078_p1 = scmp.lt.u32.totalorder %s1314_s7, %s1552_s0  ;;  %p1079_p2 = scmp.lt.u32.totalorder %s1077_s15, %s1072_s12 }
  0x17   : > { %p1075_p13 = pnand %p1074_p12, %p1073_p11  ;;  %p1081_p4 = scmp.lt.u32.totalorder %s1072_s12, %s1314_s7 }
  0x18   : > { %p1080_p3 = por %p1079_p2, %p1078_p1 }
  0x19   : > { %p1076_p0 = pneg %p1075_p13 }
  0x1a   : > { %p1082_p5 = por %p1081_p4, %p1080_p3 }
  0x1c   : > { %p1083_p6 = pnand %p1082_p5, %p1076_p0 }
  0x1e   : > { %1086 = shalt.err (!%p1083_p6)
}
  0x1f   : > { %s1087_s25 = scalar_lea.vmem %s1322_s9, 256  ;;  %s1218_s29 = smov [#allocation3]  }
  0x20   : > { %p1088_p8 = scmp.ne.s32.totalorder %s1322_s9, %s1087_s25  ;;  %s1092_s30 = sshll.u32 %s1218_s29, 4  ;;  %s1093_s30 = int_to_ptr.vmem [resolvable:$false] %s1092_s30 }
  0x21   : > { %s1094_s5 = scalar_lea.vmem %s1093_s30, 512  ;;  %p1095_p10 = scmp.lt.s32.totalorder %s1322_s9, %s1093_s30 }
  0x22   : > { %p1090_p11 = pnand %p1088_p8, %p1074_p12  ;;  %p1096_p1 = scmp.lt.s32.totalorder %s1094_s5, %s1087_s25 }
  0x24   : > { %p1091_p13 = pneg %p1090_p11  ;;  %p1097_p2 = por %p1096_p1, %p1095_p10 }
  0x26   : > { %p1098_p3 = pnand %p1097_p2, %p1091_p13 }
  0x28   : > { %1101 = shalt.err (!%p1098_p3)
}
  0x29   : > { %s1219_s6 = smov 256   ;;  %s1220_s8 = smov 128  }
  0x2a   : > { %s1221_s12 = smov 8   ;;  %p262_p10 = scmp.lt.s32.totalorder %s1216_s20, 3 }
  0x2b   : > { %1006 = dma.hbm_to_vmem [thread:$0]  (!%p1318_p9), %s1314_s7, 256, %s1322_s9, %s205_s11, %s1219_s6, %s1220_s8, %s1221_s12  }
  0x2c   : > { %s900_s13 = sshll.u32 %s1307_s28, 6  ;;  %s992_s14 = sshll.u32 %s1212_s19, 10 }
  0x2d   : > { %p1561_p0 = scmp.ge.s32.totalorder %s1216_s20, 1  ;;  %s1366_s25 = scalar_lea.hbm %s1553_s1, %s992_s14 }
  0x2e   : > { %s232_s29 = scalar_lea.vmem [#allocation6], %s900_s13  ;;  %s229_s7 = scalar_lea.sflag [#allocation7], %s1307_s28 }
  0x2f   : > { %p1359_p4 = pnand %p1561_p0, %p262_p10  ;;  %s242_s30 = sshll.u32 %s232_s29, 4  ;;  %s1368_s30 = int_to_ptr.vmem [resolvable:$true] %s242_s30 }
  0x30   : > { %s1102_s9 = scalar_lea.hbm %s1366_s25, 1024  ;;  %s1107_s8 = scalar_lea.hbm %s1553_s1, 2048 }
  0x31   : > { %p1103_p5 = scmp.ne.s32.totalorder %s1366_s25, %s1102_s9  ;;  %p1108_p11 = scmp.lt.u32.totalorder %s1366_s25, %s1553_s1 }
  0x32   : > { %p1109_p13 = scmp.lt.u32.totalorder %s1107_s8, %s1102_s9  ;;  %p1111_p2 = scmp.lt.u32.totalorder %s1102_s9, %s1366_s25 }
  0x33   : > { %p1105_p6 = pnand %p1103_p5, %p1074_p12 }
  0x34   : > { %p1110_p1 = por %p1109_p13, %p1108_p11 }
  0x35   : > { %p1106_p8 = pneg %p1105_p6 }
  0x36   : > { %p1112_p3 = por %p1111_p2, %p1110_p1 }
  0x38   : > { %p1113_p10 = pnand %p1112_p3, %p1106_p8 }
  0x3a   : > { %1116 = shalt.err (!%p1113_p10)
}
  0x3b   : > { %s1117_s13 = scalar_lea.vmem %s1368_s30, 1024  ;;  %s1222_s23 = smov [#allocation6]  }
  0x3c   : > { %p1118_p0 = scmp.ne.s32.totalorder %s1368_s30, %s1117_s13  ;;  %s1122_s24 = sshll.u32 %s1222_s23, 4  ;;  %s1123_s24 = int_to_ptr.vmem [resolvable:$false] %s1122_s24 }
  0x3d   : > { %s1124_s29 = scalar_lea.vmem %s1123_s24, 2048  ;;  %p1125_p7 = scmp.lt.s32.totalorder %s1368_s30, %s1123_s24 }
  0x3e   : > { %p1120_p5 = pnand %p1118_p0, %p1074_p12  ;;  %p1126_p11 = scmp.lt.s32.totalorder %s1124_s29, %s1117_s13 }
  0x40   : > { %p1121_p6 = pneg %p1120_p5  ;;  %p1127_p13 = por %p1126_p11, %p1125_p7 }
  0x42   : > { %p1128_p1 = pnand %p1127_p13, %p1121_p6 }
  0x44   : > { %1131 = shalt.err (!%p1128_p1)
}
  0x45   : > { %s1223_s9 = smov 16   ;;  %266 = sbr.rel (%p1359_p4) target bundleno = 427 (0x1ab), region = 36 }
  0x46   : > { %1009 = dma.hbm_to_vmem [thread:$0]  (!%p1318_p9), %s1366_s25, 1024, %s1368_s30, %s229_s7, %s1219_s6, %s1219_s6, %s1223_s9  }
  0x47   : > { %s268_s11 = sand.u32 (!%p1359_p4), 1, %s1200_s16   ;;  %p1563_p7 = scmp.ne.s32.totalorder (!%p1359_p4), %s1559_s26, 0 }
  0x48   : > { %s905_s5 = sshll.u32 (!%p1359_p4), %s268_s11, 4  ;;  %s269_s8 = scalar_lea.sflag (!%p1359_p4), [#allocation4], %s268_s11 }
  0x49   : > { %s1401_s12 = scalar_lea.vmem (!%p1359_p4), [#allocation3], %s905_s5 }
  0x4c   : > { %1183 = dma.done.wait (%p1563_p7), %s269_s8, 256  }
  0x4d   : > { %1185 = vsyncadd (%p1563_p7), %s269_s8, 4294967040  ;;  %s906_s28 = sshll.u32 %s268_s11, 6  ;;  %s278_s10 = scalar_lea.sflag [#allocation7], %s268_s11 }
  0x4e   : > { %s281_s14 = scalar_lea.vmem [#allocation6], %s906_s28 }
  0x4f   : > { %1187 = dma.done.wait (%p1563_p7), %s278_s10, 1024  }
  0x50   : > { %1189 = vsyncadd (%p1563_p7), %s278_s10, 4294966272  ;;  %p323_p9 = scmp.lt.s32.totalorder %s1208_s18, 1  ;;  %p908_p12 = scmp.ne.s32.totalorder %s1208_s18, 0 }
  0x51   : > { %v1224_v0 = vmov (!%p908_p12), 0.0  }
  0x52   : > { %s324_s6 = scalar_select %p323_p9, %s1208_s18, 1 }
  0x53   : > { %341 = sbr.rel (%p908_p12) target bundleno = 90 (0x5a), region = 48  ;;  %342 = vst [vmem:[#allocation2] sm:$0xff] (!%p908_p12), %v1224_v0  ;;  %343 = vst [vmem:[#allocation2 + $0x8] sm:$0xff] (!%p908_p12), %v1224_v0 }
  0x54   : > { %s907_s15 = sshll.u32 %s324_s6, 1  ;;  %344 = vst [vmem:[#allocation2 + $0x10] sm:$0xff] (!%p908_p12), %v1224_v0  ;;  %345 = vst [vmem:[#allocation2 + $0x18] sm:$0xff] (!%p908_p12), %v1224_v0 }
  0x55   : > { %s1416_s7 = scalar_lea.vmem %s1554_s2, %s907_s15 }
  0x5a PF: > { %v1419_v1 = vld [vmem:[%s281_s14 + $0x8] sm:$0xff]  ;;  %v1421_v2 = vld [vmem:[%s281_s14 + $0x18] sm:$0xff]  ;;  %v1423_v3 = vld [vmem:[%s281_s14] sm:$0xff]  ;;  %p983_p4 = scmp.ne.s32.totalorder %s1208_s18, 1 }
  0x5b   : > { %v355_v4 = vand.u32 15, %v1419_v1  ;;  %v357_v5 = vand.u32 15, %v1421_v2  ;;  %v1427_v6 = vld [vmem:[%s281_s14 + $0x10] sm:$0xff]  ;;  %v354_v7 = vand.u32 15, %v1423_v3  ;;  %v1430_v8 = vld [vmem:[%s281_s14 + $0x28] sm:$0xff]  ;;  %v1432_v9 = vld [vmem:[%s281_s14 + $0x38] sm:$0xff] }
  0x5c   : > { %v356_v10 = vand.u32 15, %v1427_v6  ;;  %v359_v11 = vand.u32 15, %v1430_v8  ;;  %v361_v12 = vand.u32 15, %v1432_v9  ;;  %v1437_v13 = vld [vmem:[%s281_s14 + $0x20] sm:$0xff]  ;;  %v1439_v14 = vld [vmem:[%s281_s14 + $0x30] sm:$0xff]  ;;  %v363_v15 = vshra.s32 %v1419_v1, 4 }
  0x5d   : > { %v918_v16 = vadd.s32 4294967288, %v355_v4  ;;  %v920_v17 = vadd.s32 4294967288, %v357_v5  ;;  %v917_v18 = vadd.s32 4294967288, %v354_v7  ;;  %v358_v19 = vand.u32 15, %v1437_v13  ;;  %v1071_v28 = vld [vmem:[%s1401_s12 + $0x4] ss:$8 sps:$4 sm:$0xff]  }
  0x5e   : > { %v919_v20 = vadd.s32 4294967288, %v356_v10  ;;  %v922_v21 = vadd.s32 4294967288, %v359_v11  ;;  %v924_v22 = vadd.s32 4294967288, %v361_v12  ;;  %v360_v23 = vand.u32 15, %v1439_v14  ;;  %683 = vmatprep.mubr.bf16.mxu0 %v1071_v28 }
  0x5f   : > { %v539_v24 = vcvt.s32.f32 %v918_v16  ;;  %v541_v25 = vcvt.s32.f32 %v920_v17  ;;  %v538_v26 = vcvt.s32.f32 %v917_v18  ;;  %v921_v27 = vadd.s32 4294967288, %v358_v19 }
  0x60   : > { %v540_v29 = vcvt.s32.f32 %v919_v20  ;;  %v543_v30 = vcvt.s32.f32 %v922_v21  ;;  %v545_v31 = vcvt.s32.f32 %v924_v22  ;;  %v923_v32 = vadd.s32 4294967288, %v360_v23 }
  0x61   : > { %v603_v33 = vpack.c.bf16 %v541_v25, %v539_v24  ;;  %v542_v34 = vcvt.s32.f32 %v921_v27  ;;  %v365_v35 = vshra.s32 %v1421_v2, 4  ;;  %v371_v36 = vand.u32 15, %v363_v15 }
  0x62   : > { %v602_v37 = vpack.c.bf16 %v540_v29, %v538_v26  ;;  %v605_v38 = vpack.c.bf16 %v545_v31, %v543_v30  ;;  %v544_v39 = vcvt.s32.f32 %v923_v32  ;;  %v362_v40 = vshra.s32 %v1423_v3, 4 }
  0x63   : > { %651 = vmatprep.subr.bf16.mxu0 %v603_v33  ;;  %v373_v41 = vand.u32 15, %v365_v35  ;;  %v926_v42 = vadd.s32 4294967288, %v371_v36  ;;  %v364_v43 = vshra.s32 %v1427_v6, 4  ;;  %v367_v44 = vshra.s32 %v1430_v8, 4 }
  0x64   : > { %652 = vmatpush1.bf16.msra.mxu0 %v602_v37  ;;  %v604_v45 = vpack.c.bf16 %v544_v39, %v542_v34  ;;  %v370_v46 = vand.u32 15, %v362_v40  ;;  %v369_v47 = vshra.s32 %v1432_v9, 4  ;;  %v366_v48 = vshra.s32 %v1437_v13, 4 }
  0x65   : > { %653 = vmatprep.subr.bf16.mxu0 %v605_v38  ;;  %v928_v49 = vadd.s32 4294967288, %v373_v41  ;;  %v547_v50 = vcvt.s32.f32 %v926_v42  ;;  %v372_v51 = vand.u32 15, %v364_v43  ;;  %v375_v52 = vand.u32 15, %v367_v44 }
  0x66   : > { %v925_v53 = vadd.s32 4294967288, %v370_v46  ;;  %v377_v54 = vand.u32 15, %v369_v47  ;;  %v368_v55 = vshra.s32 %v1439_v14, 4  ;;  %v374_v56 = vand.u32 15, %v366_v48 }
  0x67   : > { %v549_v57 = vcvt.s32.f32 %v928_v49  ;;  %v927_v58 = vadd.s32 4294967288, %v372_v51  ;;  %v930_v59 = vadd.s32 4294967288, %v375_v52  ;;  %v379_v60 = vshra.s32 %v1419_v1, 8 }
  0x68   : > { %654 = vmatpush1.bf16.msra.mxu0 %v604_v45  ;;  %v546_v61 = vcvt.s32.f32 %v925_v53  ;;  %v932_v62 = vadd.s32 4294967288, %v377_v54  ;;  %v376_v63 = vand.u32 15, %v368_v55  ;;  %v929_v0 = vadd.s32 4294967288, %v374_v56 }
  0x69   : > { %v607_v4 = vpack.c.bf16 %v549_v57, %v547_v50  ;;  %v548_v5 = vcvt.s32.f32 %v927_v58  ;;  %v551_v7 = vcvt.s32.f32 %v930_v59  ;;  %v381_v10 = vshra.s32 %v1421_v2, 8 }
  0x6a   : > { %v553_v11 = vcvt.s32.f32 %v932_v62  ;;  %v931_v12 = vadd.s32 4294967288, %v376_v63  ;;  %v550_v15 = vcvt.s32.f32 %v929_v0  ;;  %v387_v16 = vand.u32 15, %v379_v60 }
  0x6b   : > { %655 = vmatprep.subr.bf16.mxu0 %v607_v4  ;;  %v606_v17 = vpack.c.bf16 %v548_v5, %v546_v61  ;;  %v389_v18 = vand.u32 15, %v381_v10  ;;  %v378_v19 = vshra.s32 %v1423_v3, 8  ;;  %v380_v20 = vshra.s32 %v1427_v6, 8 }
  0x6c   : > { %v609_v21 = vpack.c.bf16 %v553_v11, %v551_v7  ;;  %v552_v22 = vcvt.s32.f32 %v931_v12  ;;  %v934_v23 = vadd.s32 4294967288, %v387_v16  ;;  %v383_v24 = vshra.s32 %v1430_v8, 8 }
  0x6d   : > { %656 = vmatpush1.bf16.msra.mxu0 %v606_v17  ;;  %v936_v25 = vadd.s32 4294967288, %v389_v18  ;;  %v386_v26 = vand.u32 15, %v378_v19  ;;  %v388_v27 = vand.u32 15, %v380_v20  ;;  %v385_v28 = vshra.s32 %v1432_v9, 8 }
  0x6e   : > { %657 = vmatprep.subr.bf16.mxu0 %v609_v21  ;;  %v608_v29 = vpack.c.bf16 %v552_v22, %v550_v15  ;;  %v555_v30 = vcvt.s32.f32 %v934_v23  ;;  %v391_v31 = vand.u32 15, %v383_v24  ;;  %v382_v32 = vshra.s32 %v1437_v13, 8 }
  0x6f   : > { %v557_v33 = vcvt.s32.f32 %v936_v25  ;;  %v933_v34 = vadd.s32 4294967288, %v386_v26  ;;  %v935_v35 = vadd.s32 4294967288, %v388_v27  ;;  %v393_v36 = vand.u32 15, %v385_v28 }
  0x70   : > { %v938_v37 = vadd.s32 4294967288, %v391_v31  ;;  %v384_v38 = vshra.s32 %v1439_v14, 8  ;;  %v390_v39 = vand.u32 15, %v382_v32  ;;  %v395_v40 = vshra.s32 %v1419_v1, 12 }
  0x71   : > { %658 = vmatpush1.bf16.msra.mxu0 %v608_v29  ;;  %v611_v41 = vpack.c.bf16 %v557_v33, %v555_v30  ;;  %v554_v42 = vcvt.s32.f32 %v933_v34  ;;  %v556_v43 = vcvt.s32.f32 %v935_v35  ;;  %v940_v44 = vadd.s32 4294967288, %v393_v36 }
  0x72   : > { %v559_v45 = vcvt.s32.f32 %v938_v37  ;;  %v392_v46 = vand.u32 15, %v384_v38  ;;  %v937_v47 = vadd.s32 4294967288, %v390_v39  ;;  %v397_v48 = vshra.s32 %v1421_v2, 12 }
  0x73   : > { %659 = vmatprep.subr.bf16.mxu0 %v611_v41  ;;  %v610_v49 = vpack.c.bf16 %v556_v43, %v554_v42  ;;  %v561_v50 = vcvt.s32.f32 %v940_v44  ;;  %v403_v51 = vand.u32 15, %v395_v40  ;;  %v394_v52 = vshra.s32 %v1423_v3, 12 }
  0x74   : > { %v939_v53 = vadd.s32 4294967288, %v392_v46  ;;  %v558_v54 = vcvt.s32.f32 %v937_v47  ;;  %v405_v55 = vand.u32 15, %v397_v48  ;;  %v396_v56 = vshra.s32 %v1427_v6, 12 }
  0x75   : > { %660 = vmatpush1.bf16.msra.mxu0 %v610_v49  ;;  %v613_v57 = vpack.c.bf16 %v561_v50, %v559_v45  ;;  %v942_v58 = vadd.s32 4294967288, %v403_v51  ;;  %v402_v59 = vand.u32 15, %v394_v52  ;;  %v399_v60 = vshra.s32 %v1430_v8, 12 }
  0x76   : > { %v560_v61 = vcvt.s32.f32 %v939_v53  ;;  %v944_v62 = vadd.s32 4294967288, %v405_v55  ;;  %v404_v63 = vand.u32 15, %v396_v56  ;;  %v401_v0 = vshra.s32 %v1432_v9, 12 }
  0x77   : > { %661 = vmatprep.subr.bf16.mxu0 %v613_v57  ;;  %v563_v4 = vcvt.s32.f32 %v942_v58  ;;  %v941_v5 = vadd.s32 4294967288, %v402_v59  ;;  %v407_v7 = vand.u32 15, %v399_v60  ;;  %v398_v10 = vshra.s32 %v1437_v13, 12 }
  0x78   : > { %v612_v11 = vpack.c.bf16 %v560_v61, %v558_v54  ;;  %v565_v12 = vcvt.s32.f32 %v944_v62  ;;  %v943_v15 = vadd.s32 4294967288, %v404_v63  ;;  %v409_v16 = vand.u32 15, %v401_v0 }
  0x79   : > { %v562_v17 = vcvt.s32.f32 %v941_v5  ;;  %v946_v18 = vadd.s32 4294967288, %v407_v7  ;;  %v400_v19 = vshra.s32 %v1439_v14, 12  ;;  %v406_v20 = vand.u32 15, %v398_v10 }
  0x7a   : > { %662 = vmatpush1.bf16.msra.mxu0 %v612_v11  ;;  %v615_v21 = vpack.c.bf16 %v565_v12, %v563_v4  ;;  %v564_v22 = vcvt.s32.f32 %v943_v15  ;;  %v948_v23 = vadd.s32 4294967288, %v409_v16  ;;  %v411_v24 = vshra.s32 %v1419_v1, 16 }
  0x7b   : > { %v567_v25 = vcvt.s32.f32 %v946_v18  ;;  %v408_v26 = vand.u32 15, %v400_v19  ;;  %v945_v27 = vadd.s32 4294967288, %v406_v20  ;;  %v413_v28 = vshra.s32 %v1421_v2, 16 }
  0x7c   : > { %663 = vmatprep.subr.bf16.mxu0 %v615_v21  ;;  %v614_v29 = vpack.c.bf16 %v564_v22, %v562_v17  ;;  %v569_v30 = vcvt.s32.f32 %v948_v23  ;;  %v419_v31 = vand.u32 15, %v411_v24  ;;  %v410_v32 = vshra.s32 %v1423_v3, 16 }
  0x7d   : > { %v947_v33 = vadd.s32 4294967288, %v408_v26  ;;  %v566_v34 = vcvt.s32.f32 %v945_v27  ;;  %v421_v35 = vand.u32 15, %v413_v28  ;;  %v412_v36 = vshra.s32 %v1427_v6, 16 }
  0x7e   : > { %664 = vmatpush1.bf16.msra.mxu0 %v614_v29  ;;  %v617_v37 = vpack.c.bf16 %v569_v30, %v567_v25  ;;  %v950_v38 = vadd.s32 4294967288, %v419_v31  ;;  %v418_v39 = vand.u32 15, %v410_v32  ;;  %v415_v40 = vshra.s32 %v1430_v8, 16 }
  0x7f   : > { %v568_v41 = vcvt.s32.f32 %v947_v33  ;;  %v952_v42 = vadd.s32 4294967288, %v421_v35  ;;  %v420_v43 = vand.u32 15, %v412_v36  ;;  %v417_v44 = vshra.s32 %v1432_v9, 16 }
  0x80   : > { %665 = vmatprep.subr.bf16.mxu0 %v617_v37  ;;  %v571_v45 = vcvt.s32.f32 %v950_v38  ;;  %v949_v46 = vadd.s32 4294967288, %v418_v39  ;;  %v423_v47 = vand.u32 15, %v415_v40  ;;  %v414_v48 = vshra.s32 %v1437_v13, 16 }
  0x81   : > { %v616_v49 = vpack.c.bf16 %v568_v41, %v566_v34  ;;  %v573_v50 = vcvt.s32.f32 %v952_v42  ;;  %v951_v51 = vadd.s32 4294967288, %v420_v43  ;;  %v425_v52 = vand.u32 15, %v417_v44 }
  0x82   : > { %v570_v53 = vcvt.s32.f32 %v949_v46  ;;  %v954_v54 = vadd.s32 4294967288, %v423_v47  ;;  %v416_v55 = vshra.s32 %v1439_v14, 16  ;;  %v422_v56 = vand.u32 15, %v414_v48 }
  0x83   : > { %666 = vmatpush1.bf16.msra.mxu0 %v616_v49  ;;  %v619_v57 = vpack.c.bf16 %v573_v50, %v571_v45  ;;  %v572_v58 = vcvt.s32.f32 %v951_v51  ;;  %v956_v59 = vadd.s32 4294967288, %v425_v52  ;;  %v427_v60 = vshra.s32 %v1419_v1, 20 }
  0x84   : > { %v575_v61 = vcvt.s32.f32 %v954_v54  ;;  %v424_v62 = vand.u32 15, %v416_v55  ;;  %v953_v63 = vadd.s32 4294967288, %v422_v56  ;;  %v429_v0 = vshra.s32 %v1421_v2, 20 }
  0x85   : > { %667 = vmatprep.subr.bf16.mxu0 %v619_v57  ;;  %v618_v4 = vpack.c.bf16 %v572_v58, %v570_v53  ;;  %v577_v5 = vcvt.s32.f32 %v956_v59  ;;  %v435_v7 = vand.u32 15, %v427_v60  ;;  %v426_v10 = vshra.s32 %v1423_v3, 20 }
  0x86   : > { %v955_v11 = vadd.s32 4294967288, %v424_v62  ;;  %v574_v12 = vcvt.s32.f32 %v953_v63  ;;  %v437_v15 = vand.u32 15, %v429_v0  ;;  %v428_v16 = vshra.s32 %v1427_v6, 20 }
  0x87   : > { %668 = vmatpush1.bf16.msra.mxu0 %v618_v4  ;;  %v621_v17 = vpack.c.bf16 %v577_v5, %v575_v61  ;;  %v958_v18 = vadd.s32 4294967288, %v435_v7  ;;  %v434_v19 = vand.u32 15, %v426_v10  ;;  %v431_v20 = vshra.s32 %v1430_v8, 20 }
  0x88   : > { %v576_v21 = vcvt.s32.f32 %v955_v11  ;;  %v960_v22 = vadd.s32 4294967288, %v437_v15  ;;  %v436_v23 = vand.u32 15, %v428_v16  ;;  %v433_v24 = vshra.s32 %v1432_v9, 20 }
  0x89   : > { %669 = vmatprep.subr.bf16.mxu0 %v621_v17  ;;  %v579_v25 = vcvt.s32.f32 %v958_v18  ;;  %v957_v26 = vadd.s32 4294967288, %v434_v19  ;;  %v439_v27 = vand.u32 15, %v431_v20  ;;  %v430_v28 = vshra.s32 %v1437_v13, 20 }
  0x8a   : > { %v620_v29 = vpack.c.bf16 %v576_v21, %v574_v12  ;;  %v581_v30 = vcvt.s32.f32 %v960_v22  ;;  %v959_v31 = vadd.s32 4294967288, %v436_v23  ;;  %v441_v32 = vand.u32 15, %v433_v24 }
  0x8b   : > { %v578_v33 = vcvt.s32.f32 %v957_v26  ;;  %v962_v34 = vadd.s32 4294967288, %v439_v27  ;;  %v432_v35 = vshra.s32 %v1439_v14, 20  ;;  %v438_v36 = vand.u32 15, %v430_v28 }
  0x8c   : > { %670 = vmatpush1.bf16.msra.mxu0 %v620_v29  ;;  %v623_v37 = vpack.c.bf16 %v581_v30, %v579_v25  ;;  %v580_v38 = vcvt.s32.f32 %v959_v31  ;;  %v964_v39 = vadd.s32 4294967288, %v441_v32  ;;  %v443_v40 = vshra.s32 %v1419_v1, 24 }
  0x8d   : > { %v583_v41 = vcvt.s32.f32 %v962_v34  ;;  %v440_v42 = vand.u32 15, %v432_v35  ;;  %v961_v43 = vadd.s32 4294967288, %v438_v36  ;;  %v445_v44 = vshra.s32 %v1421_v2, 24 }
  0x8e   : > { %671 = vmatprep.subr.bf16.mxu0 %v623_v37  ;;  %v622_v45 = vpack.c.bf16 %v580_v38, %v578_v33  ;;  %v585_v46 = vcvt.s32.f32 %v964_v39  ;;  %v451_v47 = vand.u32 15, %v443_v40  ;;  %v442_v48 = vshra.s32 %v1423_v3, 24 }
  0x8f   : > { %v963_v49 = vadd.s32 4294967288, %v440_v42  ;;  %v582_v50 = vcvt.s32.f32 %v961_v43  ;;  %v453_v51 = vand.u32 15, %v445_v44  ;;  %v444_v52 = vshra.s32 %v1427_v6, 24 }
  0x90   : > { %672 = vmatpush1.bf16.msra.mxu0 %v622_v45  ;;  %v625_v53 = vpack.c.bf16 %v585_v46, %v583_v41  ;;  %v966_v54 = vadd.s32 4294967288, %v451_v47  ;;  %v450_v55 = vand.u32 15, %v442_v48  ;;  %v447_v56 = vshra.s32 %v1430_v8, 24 }
  0x91   : > { %v584_v57 = vcvt.s32.f32 %v963_v49  ;;  %v968_v58 = vadd.s32 4294967288, %v453_v51  ;;  %v452_v59 = vand.u32 15, %v444_v52  ;;  %v449_v60 = vshra.s32 %v1432_v9, 24 }
  0x92   : > { %673 = vmatprep.subr.bf16.mxu0 %v625_v53  ;;  %v587_v61 = vcvt.s32.f32 %v966_v54  ;;  %v965_v62 = vadd.s32 4294967288, %v450_v55  ;;  %v455_v63 = vand.u32 15, %v447_v56  ;;  %v446_v0 = vshra.s32 %v1437_v13, 24  ;;  %v634_v54 = vld [vmem:[%s1416_s7] sm:$0x3] }
  0x93   : > { %v624_v4 = vpack.c.bf16 %v584_v57, %v582_v50  ;;  %v589_v5 = vcvt.s32.f32 %v968_v58  ;;  %v967_v7 = vadd.s32 4294967288, %v452_v59  ;;  %v457_v10 = vand.u32 15, %v449_v60  ;;  %v635_v58 = vld [vmem:[#allocation2] sm:$0xff] }
  0x94   : > { %v586_v11 = vcvt.s32.f32 %v965_v62  ;;  %v970_v12 = vadd.s32 4294967288, %v455_v63  ;;  %v448_v15 = vshra.s32 %v1439_v14, 24  ;;  %v454_v16 = vand.u32 15, %v446_v0  ;;  %v637_v0 = vld [vmem:[#allocation2 + $0x10] sm:$0xff] }
  0x95   : > { %674 = vmatpush1.bf16.msra.mxu0 %v624_v4  ;;  %v627_v17 = vpack.c.bf16 %v589_v5, %v587_v61  ;;  %v588_v18 = vcvt.s32.f32 %v967_v7  ;;  %v972_v19 = vadd.s32 4294967288, %v457_v10  ;;  %v910_v20 = vshrl.u32 %v1419_v1, 28  ;;  %v636_v61 = vld [vmem:[#allocation2 + $0x8] sm:$0xff]  ;;  %v638_v10 = vld [vmem:[#allocation2 + $0x18] sm:$0xff] }
  0x96   : > { %v591_v21 = vcvt.s32.f32 %v970_v12  ;;  %v456_v22 = vand.u32 15, %v448_v15  ;;  %v969_v23 = vadd.s32 4294967288, %v454_v16  ;;  %v912_v24 = vshrl.u32 %v1421_v2, 28 }
  0x97   : > { %675 = vmatprep.subr.bf16.mxu0 %v627_v17  ;;  %v626_v25 = vpack.c.bf16 %v588_v18, %v586_v11  ;;  %v593_v26 = vcvt.s32.f32 %v972_v19  ;;  %v974_v27 = vadd.s32 4294967288, %v910_v20  ;;  %v909_v28 = vshrl.u32 %v1423_v3, 28  ;;  %v725_v20 = vld [vmem:[%s1555_s3] sm:$0x3] (!%p983_p4) }
  0x98   : > { %v971_v29 = vadd.s32 4294967288, %v456_v22  ;;  %v590_v30 = vcvt.s32.f32 %v969_v23  ;;  %v976_v31 = vadd.s32 4294967288, %v912_v24  ;;  %v911_v32 = vshrl.u32 %v1427_v6, 28 }
  0x99   : > { %676 = vmatpush1.bf16.msra.mxu0 %v626_v25  ;;  %v629_v33 = vpack.c.bf16 %v593_v26, %v591_v21  ;;  %v595_v34 = vcvt.s32.f32 %v974_v27  ;;  %v973_v1 = vadd.s32 4294967288, %v909_v28  ;;  %v914_v35 = vshrl.u32 %v1430_v8, 28 }
  0x9a   : > { %v592_v36 = vcvt.s32.f32 %v971_v29  ;;  %v597_v37 = vcvt.s32.f32 %v976_v31  ;;  %v975_v2 = vadd.s32 4294967288, %v911_v32  ;;  %v916_v38 = vshrl.u32 %v1432_v9, 28 }
  0x9b   : > { %677 = vmatprep.subr.bf16.mxu0 %v629_v33  ;;  %v594_v39 = vcvt.s32.f32 %v973_v1  ;;  %v978_v40 = vadd.s32 4294967288, %v914_v35  ;;  %v913_v3 = vshrl.u32 %v1437_v13, 28  ;;  %v915_v41 = vshrl.u32 %v1439_v14, 28  ;;  %v1069_v14 = vld [vmem:[%s1401_s12] ss:$8 sps:$4 sm:$0xff]  }
  0x9c   : > { %v628_v42 = vpack.c.bf16 %v592_v36, %v590_v30  ;;  %v631_v6 = vpack.c.bf16 %v597_v37, %v595_v34  ;;  %v596_v43 = vcvt.s32.f32 %v975_v2  ;;  %v980_v44 = vadd.s32 4294967288, %v916_v38 }
  0x9d   : > { %v599_v45 = vcvt.s32.f32 %v978_v40  ;;  %v977_v46 = vadd.s32 4294967288, %v913_v3  ;;  %v979_v8 = vadd.s32 4294967288, %v915_v41  ;;  %v695_v51 = vlaneseq }
  0x9e   : > { %678 = vmatpush1.bf16.msra.mxu0 %v628_v42  ;;  %v630_v47 = vpack.c.bf16 %v596_v43, %v594_v39  ;;  %v601_v48 = vcvt.s32.f32 %v980_v44 }
  0x9f   : > { %679 = vmatprep.subr.bf16.mxu0 %v631_v6  ;;  %v598_v9 = vcvt.s32.f32 %v977_v46  ;;  %v600_v49 = vcvt.s32.f32 %v979_v8  ;;  %v696_v52 = vshrl.u32 %v695_v51, 7 }
  0xa0   : > { %v633_v50 = vpack.c.bf16 %v601_v48, %v599_v45 }
  0xa1   : > { %v632_v13 = vpack.c.bf16 %v600_v49, %v598_v9  ;;  %v697_v53 = vsub.s32 0, %v696_v52  ;;  %v701_v55 = vsub.s32 1, %v696_v52 }
  0xa2   : > { %680 = vmatpush1.bf16.msra.mxu0 %v630_v47 }
  0xa3   : > { %681 = vmatprep.subr.bf16.mxu0 %v633_v50  ;;  %v698_v56 = vrot.slane %v634_v54, %v697_v53  ;;  %v702_v57 = vrot.slane %v634_v54, %v701_v55  ;;  %v730_v21 = vrot.slane (!%p983_p4), %v725_v20, %v697_v53  ;;  %v734_v22 = vrot.slane (!%p983_p4), %v725_v20, %v701_v55 }
  0xa6   : > { %682 = vmatpush1.bf16.msra.mxu0 %v632_v13 }
  0xa9   : > { %684 = vmatmul.mubr.bf16.vlgmr.msra.gmra.mrb[0].mxu0 %v1069_v14 }
 0x17c   : > { %v685_v59 = vpop.f32.mrb[0].mxu0 }
 0x17d   : > { %v705_v60 = vmul.f32 %v698_v56, %v685_v59  ;;  %v687_v62 = vpop.f32.mrb[1].mxu0 }
 0x17e   : > { %v706_v63 = vmul.f32 %v702_v57, %v687_v62  ;;  %v689_v4 = vpop.f32.mrb[2].mxu0  ;;  %720 = sbr.rel (%p983_p4) target bundleno = 401 (0x191), region = 52 }
 0x17f   : > { %v709_v5 = vadd.f32 %v705_v60, %v635_v58  ;;  %v707_v7 = vmul.f32 %v698_v56, %v689_v4  ;;  %v691_v11 = vpop.f32.mrb[3].mxu0 }
 0x180   : > { %v710_v12 = vadd.f32 %v706_v63, %v636_v61  ;;  %v708_v15 = vmul.f32 %v702_v57, %v691_v11 }
 0x181   : > { %713 = vst [vmem:[#allocation2] sm:$0xff] %v709_v5  ;;  %v711_v16 = vadd.f32 %v707_v7, %v637_v0 }
 0x182   : > { %714 = vst [vmem:[#allocation2 + $0x8] sm:$0xff] %v710_v12  ;;  %v712_v17 = vadd.f32 %v708_v15, %v638_v10 }
 0x183   : > { %715 = vst [vmem:[#allocation2 + $0x10] sm:$0xff] %v711_v16 }
 0x184   : > { %716 = vst [vmem:[#allocation2 + $0x18] sm:$0xff] %v712_v17 }
 0x188   : > { %v721_v18 = vld [vmem:[#allocation2] sm:$0xff] }
 0x189   : > { %v722_v19 = vld [vmem:[#allocation2 + $0x8] sm:$0xff]  ;;  %v737_v25 = vadd.f32 %v730_v21, %v721_v18 }
 0x18a   : > { %v723_v23 = vld [vmem:[#allocation2 + $0x10] sm:$0xff]  ;;  %v738_v26 = vadd.f32 %v734_v22, %v722_v19 }
 0x18b   : > { %v724_v24 = vld [vmem:[#allocation2 + $0x18] sm:$0xff]  ;;  %v739_v27 = vadd.f32 %v730_v21, %v723_v23 }
 0x18c   : > { %v740_v28 = vadd.f32 %v734_v22, %v724_v24  ;;  %v993_v29 = vpack.c.bf16 %v738_v26, %v737_v25 }
 0x18e   : > { %v994_v30 = vpack.c.bf16 %v740_v28, %v739_v27  ;;  %753 = vst [vmem:[#allocation8] sm:$0xff] %v993_v29 }
 0x190   : > { %754 = vst [vmem:[#allocation8 + $0x8] sm:$0xff] %v994_v30 }
 0x191 PF: > { %p1508_p8 = scmp.eq.s32.totalorder %s893_s21, 1  ;;  %s1225_s23 = smov [#allocation8]  }
 0x192   : > { %s767_s24 = sshll.u32 %s1225_s23, 4  ;;  %s768_s24 = int_to_ptr.vmem [resolvable:$true] %s767_s24 }
 0x193   : > { %s1132_s29 = scalar_lea.vmem %s768_s24, 256  ;;  %p1139_p0 = scmp.lt.s32.totalorder %s768_s24, %s768_s24 }
 0x194   : > { %p1133_p2 = scmp.ne.s32.totalorder %s768_s24, %s1132_s29  ;;  %p1140_p5 = scmp.lt.s32.totalorder %s1132_s29, %s1132_s29 }
 0x196   : > { %p1134_p3 = pnand %p1133_p2, %p1508_p8  ;;  %p1141_p6 = por %p1140_p5, %p1139_p0 }
 0x198   : > { %p1135_p10 = pneg %p1134_p3 }
 0x19a   : > { %p1142_p11 = pnand %p1141_p6, %p1135_p10 }
 0x19c   : > { %1145 = shalt.err (!%p1142_p11)
}
 0x19d   : > { %s1146_s21 = scalar_lea.hbm %s1556_s4, 256 }
 0x19e   : > { %p1147_p13 = scmp.ne.s32.totalorder %s1556_s4, %s1146_s21  ;;  %p1152_p9 = scmp.lt.u32.totalorder %s1146_s21, %s1556_s4 }
 0x1a0   : > { %p1148_p1 = pnand %p1147_p13, %p1508_p8 }
 0x1a2   : > { %p1149_p7 = pneg %p1148_p1 }
 0x1a4   : > { %p1154_p12 = pnand %p1152_p9, %p1149_p7 }
 0x1a6   : > { %1157 = shalt.err (!%p1154_p12)
}
 0x1a7   : > { %s1226_s10 = smov 128   ;;  %s1227_s14 = smov 8  }
 0x1a8   : > { %1000 = dma.vmem_to_hbm [thread:$0]  (%p1508_p8), %s768_s24, 256, %s1556_s4, [#allocation5], %s1226_s10, %s1226_s10, %s1227_s14  }
 0x1a9   : > { %1191 = dma.done.wait (%p1508_p8), [#allocation5], 256  }
 0x1aa   : > { %1193 = vsyncadd (%p1508_p8), [#allocation5], 4294967040 }
 0x1ab PF: > { %s21_s20 = sadd.s32 1, %s1216_s20   ;;  %s1565_s15 = smov %s1200_s16 }
 0x1ac   : > { %p18_p4 = scmp.ge.s32.totalorder %s21_s20, 4   ;;  %s1566_s16 = smov %s1204_s17 }
 0x1ad   : > { %s1567_s17 = smov %s1304_s27  ;;  %s1568_s18 = smov %s1212_s19 }
 0x1ae   : > { %s1569_s19 = smov %s1571_s22  ;;  %20 = sbr.rel (!%p18_p4) target bundleno = 7 (0x7), region = 101 }
 0x1b5   :  { %783 = vsyncpa [#allocation4], 1 }
 0x1b6   :  { %785 = vsyncpa [#allocation4 + $0x1], 1 }
 0x1b7   :  { %786 = vsyncpa [#allocation7], 1 }
 0x1b8   :  { %788 = vsyncpa [#allocation7 + $0x1], 1 }
 0x1b9   :  { %789 = vsyncpa [#allocation5], 1 }
 0x1ba   :  { %791 = vsyncpa [#allocation5 + $0x1], 1 }

</bundles_post_ra>
